<compile_context>
chip_gen: v7x
topology: tpu7x:2x2x1
jax: 0.10.0
libtpu: 0.0.40
codegen_flags: <defaults>
</compile_context>

<pallas_src>
import jax
import jax.numpy as jnp
from jax import lax
from jax.experimental import pallas as pl
from jax.experimental.pallas import tpu as pltpu


def _round_up(n, m):
    return ((n + m - 1) // m) * m


def _lm_head_lora_kernel(x_ref, a_ref, wlin_ref, wb_ref, o_ref):
    # x_ref:    (B, H)    bf16   last-token activations (resident across grid)
    # a_ref:    (B, r)    f32    scaled LoRA-A projection (resident across grid)
    # wlin_ref: (TV, H)   bf16   vocab tile of frozen head weight (out x in)
    # wb_ref:   (TV, r)   f32    vocab tile of LoRA-B weight (out x in)
    # o_ref:    (B, TV)   f32
    #
    # Contract on the last (lane) dim of BOTH operands — no in-kernel transpose.
    base = lax.dot_general(
        x_ref[...], wlin_ref[...],
        dimension_numbers=(((1,), (1,)), ((), ())),
        preferred_element_type=jnp.float32)                    # (B, TV)
    lora = lax.dot_general(
        a_ref[...], wb_ref[...],
        dimension_numbers=(((1,), (1,)), ((), ())),
        preferred_element_type=jnp.float32)                    # (B, TV)
    o_ref[...] = base + lora


def lm_head_lora_forward(x, w_lin, w_a, w_b, scaling, *, tv=None):
    """x: (B, S, H) any float dtype; weights as in the PyTorch module.

    Returns (B, V) float32 logits over the restricted id_list vocabulary.
    """
    x_last = x[:, -1, :].astype(jnp.float32)                   # (B, H) — glue slice
    batch, hidden = x_last.shape
    vocab, rank = w_b.shape

    # LoRA-A projection is tiny (B, r): compute once in f32 (matches PyTorch),
    # fold the scaling in so the kernel only does two matmuls + an add.
    a_out = (x_last @ w_a.astype(jnp.float32).T) * float(scaling)   # (B, r) f32

    # Lane-dense vocab tile (multiple of 128); pad V up to a multiple of it so
    # every output store is an unmasked full-lane vst. 512 keeps two buffers of
    # the bf16 W_lin tile comfortably inside v7x's scoped VMEM for real H.
    if tv is None:
        tv = min(_round_up(vocab, 128), 512)
    tv = _round_up(tv, 128)
    v_pad = _round_up(vocab, tv)
    n_tiles = v_pad // tv

    # Weight streaming dominates: cast the big frozen head weight (and x) to
    # bf16; keep the tiny W_b / a_out in f32 (costs nothing, no extra error).
    w_lin_p = jnp.pad(w_lin.astype(jnp.bfloat16), ((0, v_pad - vocab), (0, 0)))
    w_b_p = jnp.pad(w_b.astype(jnp.float32), ((0, v_pad - vocab), (0, 0)))
    x_bf16 = x_last.astype(jnp.bfloat16)

    cost = pl.CostEstimate(
        flops=2 * batch * hidden * v_pad + 2 * batch * rank * v_pad,
        transcendentals=0,
        bytes_accessed=(v_pad * hidden * 2 + v_pad * rank * 4
                        + batch * hidden * 2 + batch * rank * 4
                        + batch * v_pad * 4),
    )

    out_padded = pl.pallas_call(
        _lm_head_lora_kernel,
        out_shape=jax.ShapeDtypeStruct((batch, v_pad), jnp.float32),
        grid_spec=pltpu.PrefetchScalarGridSpec(
            num_scalar_prefetch=0,
            grid=(n_tiles,),
            in_specs=[
                pl.BlockSpec((batch, hidden), lambda j: (0, 0)),   # x (resident)
                pl.BlockSpec((batch, rank), lambda j: (0, 0)),     # a_out (resident)
                pl.BlockSpec((tv, hidden), lambda j: (j, 0)),      # W_lin vocab tile
                pl.BlockSpec((tv, rank), lambda j: (j, 0)),        # W_b vocab tile
            ],
            out_specs=pl.BlockSpec((batch, tv), lambda j: (0, j)),
        ),
        compiler_params=pltpu.CompilerParams(
            dimension_semantics=("parallel",),
            vmem_limit_bytes=64 * 1024 * 1024),
        cost_estimate=cost,
    )(x_bf16, a_out, w_lin_p, w_b_p)

    return out_padded[:, :vocab]


def _reference(x, w_lin, w_a, w_b, scaling):
    x_last = x[:, -1, :].astype(jnp.float32)
    linear_out = x_last @ w_lin.T
    lora_out = (x_last @ w_a.T) @ w_b.T
    return linear_out + lora_out * scaling


if __name__ == "__main__":
    # Small shapes consistent with the module's forward:
    #   batch=2, seq=8, hidden=32, |id_list|=16 (restricted vocab), lora_r=4
    batch, seq, hidden = 2, 8, 32
    vocab, rank = 16, 4
    lora_alpha, lora_r = 16.0, float(rank)
    scaling = lora_alpha / lora_r

    key = jax.random.PRNGKey(0)
    k_x, k_lin, k_a, k_b = jax.random.split(key, 4)

    x = jax.random.normal(k_x, (batch, seq, hidden), dtype=jnp.float32)
    # original_lm_head.weight[id_list, :]  -> (V, H)
    w_lin = jax.random.normal(k_lin, (vocab, hidden), dtype=jnp.float32) * 0.02
    # lora_A weight -> (r, H)
    w_a = jax.random.normal(k_a, (rank, hidden), dtype=jnp.float32) * 0.1
    # lora_B weight[id_list, :] -> (V, r)
    w_b = jax.random.normal(k_b, (vocab, rank), dtype=jnp.float32) * 0.1

    out = lm_head_lora_forward(x, w_lin, w_a, w_b, scaling)
    out = jax.block_until_ready(out)

    ref = _reference(x, w_lin, w_a, w_b, scaling)
    assert out.shape == (batch, vocab), out.shape
    # bf16 weight/activation stream -> slightly looser tolerance than pure f32.
    assert jnp.allclose(out, ref, atol=3e-2, rtol=3e-2), "mismatch vs reference"

    print("KERNEL_OK")
</pallas_src>

<mosaic_0001>
module attributes {stable_mosaic.version = 11 : i64} {
  func.func @_lm_head_lora_kernel(%arg0: i32, %arg1: memref<2x32xbf16, #tpu.memory_space<vmem>>, %arg2: memref<2x4xf32, #tpu.memory_space<vmem>>, %arg3: memref<128x32xbf16, #tpu.memory_space<vmem>>, %arg4: memref<128x4xf32, #tpu.memory_space<vmem>>, %arg5: memref<2x128xf32, #tpu.memory_space<vmem>>) attributes {dimension_semantics = [#tpu.dimension_semantics<parallel>], iteration_bounds = array<i64: 1>, scalar_prefetch = 0 : i64, scratch_operands = 0 : i64, tpu.core_type = #tpu.core_type<tc>, window_params = [{pipeline_mode = #tpu.pipeline_mode<synchronous>, transform_indices = @transform_0, window_bounds = array<i64: 2, 32>}, {pipeline_mode = #tpu.pipeline_mode<synchronous>, transform_indices = @transform_1, window_bounds = array<i64: 2, 4>}, {transform_indices = @transform_2, window_bounds = array<i64: 128, 32>}, {transform_indices = @transform_3, window_bounds = array<i64: 128, 4>}, {transform_indices = @transform_4, window_bounds = array<i64: 2, 128>}]} {
    %c0 = arith.constant 0 : index
    %c0_0 = arith.constant 0 : index
    %0 = vector.load %arg1[%c0, %c0_0] : memref<2x32xbf16, #tpu.memory_space<vmem>>, vector<2x32xbf16>
    %c0_1 = arith.constant 0 : index
    %c0_2 = arith.constant 0 : index
    %1 = vector.load %arg3[%c0_1, %c0_2] : memref<128x32xbf16, #tpu.memory_space<vmem>>, vector<128x32xbf16>
    %cst = arith.constant dense<0.000000e+00> : vector<2x128xf32>
    %2 = tpu.matmul %0, %1, %cst {dimension_numbers = #tpu.dot_dimension_numbers<[1], [1], [0], [0], [0, 0, 1, 0], [], []>} : vector<2x32xbf16>, vector<128x32xbf16>, vector<2x128xf32> -> vector<2x128xf32>
    %c0_3 = arith.constant 0 : index
    %c0_4 = arith.constant 0 : index
    %3 = vector.load %arg2[%c0_3, %c0_4] : memref<2x4xf32, #tpu.memory_space<vmem>>, vector<2x4xf32>
    %c0_5 = arith.constant 0 : index
    %c0_6 = arith.constant 0 : index
    %4 = vector.load %arg4[%c0_5, %c0_6] : memref<128x4xf32, #tpu.memory_space<vmem>>, vector<128x4xf32>
    %cst_7 = arith.constant dense<0.000000e+00> : vector<2x128xf32>
    %5 = tpu.matmul %3, %4, %cst_7 {dimension_numbers = #tpu.dot_dimension_numbers<[1], [1], [0], [0], [0, 0, 1, 0], [], []>} : vector<2x4xf32>, vector<128x4xf32>, vector<2x128xf32> -> vector<2x128xf32>
    %6 = arith.addf %2, %5 : vector<2x128xf32>
    %c0_8 = arith.constant 0 : index
    %c0_9 = arith.constant 0 : index
    %7 = vector.load %arg5[%c0_8, %c0_9] : memref<2x128xf32, #tpu.memory_space<vmem>>, vector<2x128xf32>
    tpu.vector_store %arg5[%c0_8, %c0_9], %6 {strides = array<i32>} : memref<2x128xf32, #tpu.memory_space<vmem>>, vector<2x128xf32>,
    return
  }
  func.func @transform_0(%arg0: i32) -> (i32, i32) {
    %c0_i32 = arith.constant 0 : i32
    %c0_i32_0 = arith.constant 0 : i32
    %c0_i32_1 = arith.constant 0 : i32
    return %c0_i32, %c0_i32_0 : i32, i32
  }
  func.func @transform_1(%arg0: i32) -> (i32, i32) {
    %c0_i32 = arith.constant 0 : i32
    %c0_i32_0 = arith.constant 0 : i32
    %c0_i32_1 = arith.constant 0 : i32
    return %c0_i32, %c0_i32_0 : i32, i32
  }
  func.func @transform_2(%arg0: i32) -> (i32, i32) {
    %c0_i32 = arith.constant 0 : i32
    %c0_i32_0 = arith.constant 0 : i32
    return %arg0, %c0_i32 : i32, i32
  }
  func.func @transform_3(%arg0: i32) -> (i32, i32) {
    %c0_i32 = arith.constant 0 : i32
    %c0_i32_0 = arith.constant 0 : i32
    return %arg0, %c0_i32 : i32, i32
  }
  func.func @transform_4(%arg0: i32) -> (i32, i32) {
    %c0_i32 = arith.constant 0 : i32
    %c0_i32_0 = arith.constant 0 : i32
    return %c0_i32, %arg0 : i32, i32
  }
}

</mosaic_0001>

<bundles_post_ra>
// kernel: tpu_custom_call.1
= control target key start
LH: loop header
LB: loop body
LE: loop exit
PB: predicated region body
PF: predicated region fallthrough
CT: control target
= control target key end

     0   :  { %9 = vsyncpa [#allocation3], 0  ;;  %s776_s0 = inlined_call_operand.hbm [shape: bf16[2,32], index: 0, kind: input, shape index: {}]   ;;  %s777_s1 = inlined_call_operand.hbm [shape: f32[2,4], index: 1, kind: input, shape index: {}]   ;;  %s778_s2 = inlined_call_operand.hbm [shape: bf16[128,32], index: 2, kind: input, shape index: {}]   ;;  %s779_s3 = inlined_call_operand.hbm [shape: f32[128,4], index: 3, kind: input, shape index: {}]   ;;  %s780_s4 = inlined_call_operand.hbm [shape: f32[2,128], index: 4, kind: output, shape index: {}]  }
   0x1   :  { %10 = vsyncpa [#allocation6], 0 }
   0x2   :  { %11 = vsyncpa [#allocation9], 0 }
   0x3   :  { %12 = vsyncpa [#allocation4], 0  ;;  %s629_s15 = smov [#allocation5]   ;;  %s630_s17 = smov [#allocation2]  }
   0x4   :  { %s29_s16 = sshll.u32 %s629_s15, 4  ;;  %s19_s18 = sshll.u32 %s630_s17, 4  ;;  %s30_s16 = int_to_ptr.vmem [resolvable:$true] %s29_s16  ;;  %s20_s18 = int_to_ptr.vmem [resolvable:$true] %s19_s18 }
   0x5   :  { %s511_s21 = scalar_lea.hbm %s777_s1, 32 }
   0x6   :  { %p512_p0 = scmp.ne.s32.totalorder %s777_s1, %s511_s21  ;;  %p515_p1 = scmp.lt.u32.totalorder %s511_s21, %s777_s1 }
   0x8   :  { %p517_p2 = pnand %p515_p1, %p512_p0 }
   0xa   :  { %520 = shalt.err (!%p517_p2)
}
   0xb   :  { %s521_s26 = scalar_lea.vmem %s30_s16, 32  ;;  %p526_p4 = scmp.lt.s32.totalorder %s30_s16, %s30_s16 }
   0xc   :  { %p522_p3 = scmp.ne.s32.totalorder %s30_s16, %s521_s26  ;;  %p527_p5 = scmp.lt.s32.totalorder %s521_s26, %s521_s26 }
   0xe   :  { %p528_p6 = por %p527_p5, %p526_p4 }
  0x10   :  { %p529_p7 = pnand %p528_p6, %p522_p3 }
  0x12   :  { %532 = shalt.err (!%p529_p7)
}
  0x13   :  { %32 = dma.hbm_to_vmem [thread:$0]  %s777_s1, 32, %s30_s16, [#allocation6]  }
  0x14   :  { %s533_s5 = scalar_lea.hbm %s776_s0, 16 }
  0x15   :  { %p534_p8 = scmp.ne.s32.totalorder %s776_s0, %s533_s5  ;;  %p537_p9 = scmp.lt.u32.totalorder %s533_s5, %s776_s0 }
  0x17   :  { %p539_p10 = pnand %p537_p9, %p534_p8 }
  0x19   :  { %542 = shalt.err (!%p539_p10)
}
  0x1a   :  { %s543_s10 = scalar_lea.vmem %s20_s18, 16  ;;  %s547_s11 = scalar_lea.vmem %s20_s18, 32 }
  0x1b   :  { %p544_p11 = scmp.ne.s32.totalorder %s20_s18, %s543_s10  ;;  %p548_p12 = scmp.lt.s32.totalorder %s20_s18, %s20_s18 }
  0x1c   :  { %p549_p13 = scmp.lt.s32.totalorder %s547_s11, %s543_s10 }
  0x1e   :  { %p550_p0 = por %p549_p13, %p548_p12 }
  0x20   :  { %p551_p1 = pnand %p550_p0, %p544_p11 }
  0x22   :  { %554 = shalt.err (!%p551_p1)
}
  0x23   :  { %22 = dma.hbm_to_vmem [thread:$0]  %s776_s0, 16, %s20_s18, [#allocation3]  }
  0x24   :  { %s631_s13 = smov [#allocation7]   ;;  %s555_s17 = scalar_lea.hbm %s778_s2, 1024 }
  0x25   :  { %s38_s14 = sshll.u32 %s631_s13, 4  ;;  %p556_p2 = scmp.ne.s32.totalorder %s778_s2, %s555_s17  ;;  %s39_s14 = int_to_ptr.vmem [resolvable:$true] %s38_s14 }
  0x26   :  { %p559_p3 = scmp.lt.u32.totalorder %s555_s17, %s778_s2 }
  0x28   :  { %p561_p4 = pnand %p559_p3, %p556_p2 }
  0x2a   :  { %564 = shalt.err (!%p561_p4)
}
  0x2b   :  { %s565_s23 = scalar_lea.vmem %s39_s14, 1024  ;;  %p570_p6 = scmp.lt.s32.totalorder %s39_s14, %s39_s14 }
  0x2c   :  { %p566_p5 = scmp.ne.s32.totalorder %s39_s14, %s565_s23  ;;  %p571_p7 = scmp.lt.s32.totalorder %s565_s23, %s565_s23 }
  0x2e   :  { %p572_p8 = por %p571_p7, %p570_p6 }
  0x30   :  { %p573_p9 = pnand %p572_p8, %p566_p5 }
  0x32   :  { %576 = shalt.err (!%p573_p9)
}
  0x33   :  { %s632_s0 = smov 64   ;;  %s633_s18 = smov 4  }
  0x34   :  { %44 = dma.hbm_to_vmem [thread:$0]  %s778_s2, 1024, %s39_s14, [#allocation6], %s632_s0, %s632_s0, %s633_s18  }
  0x35   :  { %s634_s26 = smov [#allocation8]   ;;  %s577_s30 = scalar_lea.hbm %s779_s3, 2048 }
  0x36   :  { %s50_s27 = sshll.u32 %s634_s26, 4  ;;  %p578_p10 = scmp.ne.s32.totalorder %s779_s3, %s577_s30  ;;  %s51_s27 = int_to_ptr.vmem [resolvable:$true] %s50_s27 }
  0x37   :  { %p581_p11 = scmp.lt.u32.totalorder %s577_s30, %s779_s3 }
  0x39   :  { %p583_p12 = pnand %p581_p11, %p578_p10 }
  0x3b   :  { %586 = shalt.err (!%p583_p12)
}
  0x3c   :  { %s587_s9 = scalar_lea.vmem %s51_s27, 2048  ;;  %p592_p0 = scmp.lt.s32.totalorder %s51_s27, %s51_s27 }
  0x3d   :  { %p588_p13 = scmp.ne.s32.totalorder %s51_s27, %s587_s9  ;;  %p593_p1 = scmp.lt.s32.totalorder %s587_s9, %s587_s9 }
  0x3f   :  { %p594_p2 = por %p593_p1, %p592_p0 }
  0x41   :  { %p595_p3 = pnand %p594_p2, %p588_p13 }
  0x43   :  { %598 = shalt.err (!%p595_p3)
}
  0x44   :  { %s635_s2 = smov 128   ;;  %s636_s10 = smov 8  }
  0x45   :  { %56 = dma.hbm_to_vmem [thread:$0]  %s779_s3, 2048, %s51_s27, [#allocation9], %s635_s2, %s635_s2, %s636_s10  }
  0x46   :  { %621 = dma.done.wait [#allocation3], 16  }
  0x47   :  { %622 = vsyncadd [#allocation3], 4294967280 }
  0x48   :  { %623 = dma.done.wait [#allocation6], 1056  }
  0x49   :  { %624 = vsyncadd [#allocation6], 4294966240 }
  0x4a   :  { %625 = dma.done.wait [#allocation9], 2048  }
  0x4b   :  { %626 = vsyncadd [#allocation9], 4294965248  ;;  %v637_v0 = vmov 0.0|0.0   ;;  %v638_v1 = vmov 0.0   ;;  %vm639_vm0 = vmmov 0   ;;  %vm104_vm1 = vcmask 31744  }
  0x4c   :  { %459 = vmatprep.subr.bf16.mxu0 %v637_v0  ;;  %439 = vmatprep.subr.bf16.mxu1 %v638_v1  ;;  %vm720_vm2 = vmpackc.low %vm104_vm1, %vm104_vm1  ;;  %v88_v3 = vld [vmem:[#allocation8] sm:$0xff]  ;;  %v89_v4 = vld [vmem:[#allocation8 + $0x8] sm:$0xff]  ;;  %vm266_vm3 = vcmask 261120   ;;  %s640_s3 = smov [#allocation10]  }
  0x4d   :  { %436 = vmatprep.mubr.msk.f32.mxu0 %vm639_vm0, %v638_v1  ;;  %455 = vmatprep.mubr.msk.bf16.mxu1 %vm639_vm0, %v638_v1  ;;  %v460_v5 = vpack.c.bf16 %v89_v4, %v88_v3  ;;  %v503_v6 = vld [vmem:[#allocation7] sm:$0xff]   ;;  %v90_v8 = vld [vmem:[#allocation8 + $0x10] sm:$0xff]  ;;  %v91_v9 = vld [vmem:[#allocation8 + $0x18] sm:$0xff]  ;;  %s341_s12 = sshll.u32 %s640_s3, 4  ;;  %s342_s12 = int_to_ptr.vmem [resolvable:$true] %s341_s12 }
  0x4e   :  { %v271_v7 = vsel %vm266_vm3, %v503_v6, 0  ;;  %v504_v10 = vld [vmem:[#allocation7 + $0x8] sm:$0xff]   ;;  %v464_v11 = vpack.c.bf16 %v91_v9, %v90_v8  ;;  %v92_v13 = vld [vmem:[#allocation8 + $0x20] sm:$0xff]  ;;  %v505_v15 = vld [vmem:[#allocation7 + $0x10] sm:$0xff]   ;;  %s599_s13 = scalar_lea.vmem %s342_s12, 32  ;;  %p604_p5 = scmp.lt.s32.totalorder %s342_s12, %s342_s12 }
  0x4f   :  { %462 = vmatpush3.bf16.xpose.msk.msra.mxu0 %vm720_vm2, %v460_v5  ;;  %440 = vmatpush3.bf16.xpose.msra.mxu1 %v271_v7  ;;  %v274_v12 = vsel %vm266_vm3, %v504_v10, 0  ;;  %v93_v14 = vld [vmem:[#allocation8 + $0x28] sm:$0xff]  ;;  %v277_v17 = vsel %vm266_vm3, %v505_v15, 0  ;;  %v94_v18 = vld [vmem:[#allocation8 + $0x30] sm:$0xff]  ;;  %v95_v19 = vld [vmem:[#allocation8 + $0x38] sm:$0xff]  ;;  %p600_p4 = scmp.ne.s32.totalorder %s342_s12, %s599_s13  ;;  %p605_p6 = scmp.lt.s32.totalorder %s599_s13, %s599_s13 }
  0x50   :  { %463 = vmatprep.subr.bf16.mxu0 %v637_v0  ;;  %441 = vmatprep.subr.bf16.mxu1 %v638_v1  ;;  %v468_v16 = vpack.c.bf16 %v93_v14, %v92_v13  ;;  %v506_v20 = vld [vmem:[#allocation7 + $0x18] sm:$0xff]   ;;  %v472_v21 = vpack.c.bf16 %v95_v19, %v94_v18  ;;  %v96_v23 = vld [vmem:[#allocation8 + $0x40] sm:$0xff]  ;;  %v97_v24 = vld [vmem:[#allocation8 + $0x48] sm:$0xff] }
  0x51   :  { %v280_v22 = vsel %vm266_vm3, %v506_v20, 0  ;;  %v507_v25 = vld [vmem:[#allocation7 + $0x20] sm:$0xff]   ;;  %v476_v26 = vpack.c.bf16 %v97_v24, %v96_v23  ;;  %v98_v28 = vld [vmem:[#allocation8 + $0x50] sm:$0xff]  ;;  %v99_v29 = vld [vmem:[#allocation8 + $0x58] sm:$0xff]  ;;  %p606_p7 = por %p605_p6, %p604_p5 }
  0x52   :  { %v283_v27 = vsel %vm266_vm3, %v507_v25, 0  ;;  %v508_v30 = vld [vmem:[#allocation7 + $0x28] sm:$0xff]   ;;  %v480_v31 = vpack.c.bf16 %v99_v29, %v98_v28  ;;  %v100_v33 = vld [vmem:[#allocation8 + $0x60] sm:$0xff]  ;;  %v509_v35 = vld [vmem:[#allocation7 + $0x30] sm:$0xff]  }
  0x53   :  { %v286_v32 = vsel %vm266_vm3, %v508_v30, 0  ;;  %v101_v34 = vld [vmem:[#allocation8 + $0x68] sm:$0xff]  ;;  %v289_v37 = vsel %vm266_vm3, %v509_v35, 0  ;;  %v102_v38 = vld [vmem:[#allocation8 + $0x70] sm:$0xff]  ;;  %v103_v39 = vld [vmem:[#allocation8 + $0x78] sm:$0xff]  ;;  %p607_p8 = pnand %p606_p7, %p600_p4 }
  0x54   :  { %v484_v36 = vpack.c.bf16 %v101_v34, %v100_v33  ;;  %v510_v40 = vld [vmem:[#allocation7 + $0x38] sm:$0xff]   ;;  %v488_v41 = vpack.c.bf16 %v103_v39, %v102_v38 }
  0x55   :  { %v292_v42 = vsel %vm266_vm3, %v510_v40, 0  ;;  %v87_v43 = vld [vmem:[#allocation5] sm:$0x3]  ;;  %v70_v44 = vld [vmem:[#allocation2] sm:$0x1] }
  0x57   :  { %466 = vmatpush3.bf16.xpose.msk.msra.mxu0 %vm720_vm2, %v464_v11  ;;  %442 = vmatpush3.bf16.xpose.msra.mxu1 %v274_v12 }
  0x58   :  { %467 = vmatprep.subr.bf16.mxu0 %v637_v0  ;;  %443 = vmatprep.subr.bf16.mxu1 %v638_v1 }
  0x5f   :  { %470 = vmatpush3.bf16.xpose.msk.msra.mxu0 %vm720_vm2, %v468_v16  ;;  %444 = vmatpush3.bf16.xpose.msra.mxu1 %v277_v17 }
  0x60   :  { %471 = vmatprep.subr.bf16.mxu0 %v637_v0  ;;  %445 = vmatprep.subr.bf16.mxu1 %v638_v1 }
  0x67   :  { %474 = vmatpush3.bf16.xpose.msk.msra.mxu0 %vm720_vm2, %v472_v21  ;;  %446 = vmatpush3.bf16.xpose.msra.mxu1 %v280_v22 }
  0x68   :  { %475 = vmatprep.subr.bf16.mxu0 %v637_v0  ;;  %447 = vmatprep.subr.bf16.mxu1 %v638_v1 }
  0x6f   :  { %478 = vmatpush3.bf16.xpose.msk.msra.mxu0 %vm720_vm2, %v476_v26  ;;  %448 = vmatpush3.bf16.xpose.msra.mxu1 %v283_v27 }
  0x70   :  { %479 = vmatprep.subr.bf16.mxu0 %v637_v0  ;;  %449 = vmatprep.subr.bf16.mxu1 %v638_v1 }
  0x77   :  { %482 = vmatpush3.bf16.xpose.msk.msra.mxu0 %vm720_vm2, %v480_v31  ;;  %450 = vmatpush3.bf16.xpose.msra.mxu1 %v286_v32 }
  0x78   :  { %483 = vmatprep.subr.bf16.mxu0 %v637_v0  ;;  %451 = vmatprep.subr.bf16.mxu1 %v638_v1 }
  0x7f   :  { %486 = vmatpush3.bf16.xpose.msk.msra.mxu0 %vm720_vm2, %v484_v36  ;;  %452 = vmatpush3.bf16.xpose.msra.mxu1 %v289_v37 }
  0x80   :  { %487 = vmatprep.subr.bf16.mxu0 %v637_v0  ;;  %453 = vmatprep.subr.bf16.mxu1 %v638_v1 }
  0x87   :  { %490 = vmatpush3.bf16.xpose.msk.msra.mxu0 %vm720_vm2, %v488_v41  ;;  %454 = vmatpush3.bf16.xpose.msra.mxu1 %v292_v42 }
  0x8e   :  { %437 = vmatmul.mubr.msk.f32.vlgmr.msra.gmra.mrb[0].mxu0 %vm104_vm1, %v87_v43  ;;  %456 = vmatmul.mubr.msk.bf16.vlgmr.msra.gmra.mrb[0].mxu1 %vm266_vm3, %v70_v44 }
 0x161   :  { %v222_v45 = vpop.f32.mrb[0].mxu0  ;;  %v328_v47 = vpop.f32.mrb[0].mxu1 }
 0x162   :  { %v438_v46 = vpop.f32.mrb[1].mxu0  ;;  %v329_v48 = vadd.f32 %v328_v47, %v222_v45  ;;  %v457_v49 = vpop.f32.mrb[1].mxu1 }
 0x163   :  { %v331_v50 = vpop.f32.mrb[2].mxu1 }
 0x164   :  { %334 = vst [vmem:[#allocation10] sm:$0x3] %v329_v48  ;;  %v458_v51 = vpop.f32.mrb[3].mxu1 }
 0x165   :  { %610 = shalt.err (!%p607_p8)
}
 0x166   :  { %s611_s16 = scalar_lea.hbm %s780_s4, 32 }
 0x167   :  { %p612_p9 = scmp.ne.s32.totalorder %s780_s4, %s611_s16  ;;  %p615_p10 = scmp.lt.u32.totalorder %s611_s16, %s780_s4 }
 0x169   :  { %p617_p11 = pnand %p615_p10, %p612_p9 }
 0x16b   :  { %620 = shalt.err (!%p617_p11)
}
 0x16c   :  { %344 = dma.vmem_to_hbm [thread:$0]  %s342_s12, 32, %s780_s4, [#allocation4]  }
 0x16d   :  { %627 = dma.done.wait [#allocation4], 32  }
 0x16e   :  { %628 = vsyncadd [#allocation4], 4294967264 }
 0x16f   :  { %348 = vsyncpa [#allocation3], 1 }
 0x170   :  { %349 = vsyncpa [#allocation6], 1 }
 0x171   :  { %350 = vsyncpa [#allocation9], 1 }
 0x172   :  { %351 = vsyncpa [#allocation4], 1 }

</bundles_post_ra>
